<compile_context>
chip_gen: v5e
topology: v5e:2x2
jax: 0.10.0
libtpu: 0.0.40
codegen_flags: <defaults>
</compile_context>

<pallas_src>
import math

import jax
import jax.numpy as jnp
from jax.experimental import pallas as pl
from jax.experimental.pallas import tpu as pltpu

HIDDEN = 128


def _round_up(n, m):
    return ((n + m - 1) // m) * m


def dqn_kernel(x_ref, w1_ref, bias_ref, w2_ref, w3_ref, out_ref):
    n_pad = out_ref.shape[-1]           # padded Q-head width (static, e.g. 8)

    # ---- Layer 1: K = n_obs is tiny -> unrolled VPU broadcast-FMA in f32. ----
    x = x_ref[...]                      # (TB, n_obs) f32
    w1 = w1_ref[...]                    # (n_obs, 128) f32
    n_obs = x.shape[1]
    # Seed the accumulator with the bias (row 0 of the packed bias slab).
    acc = x[:, 0:1] * w1[0:1, :] + bias_ref[0:1, :]
    for k in range(1, n_obs):           # static unroll (n_obs is small)
        acc = acc + x[:, k:k + 1] * w1[k:k + 1, :]
    h1 = jnp.maximum(acc, 0.0)

    # ---- Layer 2: bf16 operands on the MXU, f32 accumulation. ----
    h2 = jnp.dot(h1.astype(jnp.bfloat16), w2_ref[...],
                 preferred_element_type=jnp.float32)
    h2 = jnp.maximum(h2 + bias_ref[1:2, :], 0.0)

    # ---- Layer 3 (Q head, padded to n_pad lanes): bf16 MXU, f32 accum. ----
    h3 = jnp.dot(h2.astype(jnp.bfloat16), w3_ref[...],
                 preferred_element_type=jnp.float32)      # (TB, n_pad)
    h3 = jnp.maximum(h3 + bias_ref[2:3, 0:n_pad], 0.0)

    out_ref[...] = h3.astype(out_ref.dtype)   # narrow (TB, n_pad) store


def prepare_params(w1, b1, w2, b2, w3, b3):
    """One-time parameter prep (do NOT call per forward step):
       * pad the Q head to n_pad (=max(8, round_up(n_actions,8))) output lanes,
       * cast the MXU weights (layers 2/3) to bf16,
       * pack b1/b2/b3 into a single (8, HIDDEN) f32 slab (rows 0/1/2)."""
    n_obs, hidden = w1.shape
    assert hidden == HIDDEN and w2.shape == (HIDDEN, HIDDEN)
    n_actions = w3.shape[1]
    n_pad = max(8, _round_up(n_actions, 8))

    w3_pad = jnp.pad(w3, ((0, 0), (0, n_pad - n_actions)))        # (128, n_pad)
    b3_pad = jnp.pad(b3, ((0, 0), (0, HIDDEN - n_actions)))       # (1, 128)

    bias_pack = jnp.zeros((8, HIDDEN), jnp.float32)
    bias_pack = bias_pack.at[0:1, :].set(b1.astype(jnp.float32))
    bias_pack = bias_pack.at[1:2, :].set(b2.astype(jnp.float32))
    bias_pack = bias_pack.at[2:3, :].set(b3_pad.astype(jnp.float32))

    return (w1.astype(jnp.float32),            # layer-1 weight stays f32 (VPU)
            bias_pack,                         # (8, 128) f32
            w2.astype(jnp.bfloat16),           # (128, 128) bf16
            w3_pad.astype(jnp.bfloat16))       # (128, n_pad) bf16


def dqn_forward(x, w1, bias_pack, w2_bf, w3_pad_bf, n_actions,
                *, max_block_b=2048):
    """Fused MLP forward.  Parameters must come from prepare_params().
    Returns (B, n_actions) f32."""
    B, n_obs = x.shape
    n_pad = w3_pad_bf.shape[1]
    assert w1.shape == (n_obs, HIDDEN)
    assert bias_pack.shape == (8, HIDDEN)
    assert w2_bf.shape == (HIDDEN, HIDDEN) and w3_pad_bf.shape == (HIDDEN, n_pad)
    assert n_actions <= n_pad

    # Batch tiling: aim for grid >= 2 (v7x has 2 TensorCores) while capping the
    # tile at max_block_b rows to amortize per-grid-step overhead.
    TB = min(max_block_b, max(8, _round_up(-(-B // 2), 8)))
    Bp = _round_up(B, TB)
    if Bp != B:
        x = jnp.pad(x, ((0, Bp - B), (0, 0)))
    grid = (Bp // TB,)

    flops = 2 * Bp * (n_obs * HIDDEN + HIDDEN * HIDDEN + HIDDEN * n_pad)
    bytes_accessed = (
        Bp * n_obs * 4                         # x
        + w1.size * 4 + bias_pack.size * 4     # layer-1 weight + packed biases
        + w2_bf.size * 2 + w3_pad_bf.size * 2  # bf16 MXU weights
        + Bp * n_pad * 4                       # narrow padded output
    )

    out = pl.pallas_call(
        dqn_kernel,
        out_shape=jax.ShapeDtypeStruct((Bp, n_pad), jnp.float32),
        grid_spec=pltpu.PrefetchScalarGridSpec(
            num_scalar_prefetch=0,
            grid=grid,
            in_specs=[
                pl.BlockSpec((TB, n_obs), lambda i: (i, 0)),      # x: batch-tiled
                pl.BlockSpec((n_obs, HIDDEN), lambda i: (0, 0)),  # w1 resident
                pl.BlockSpec((8, HIDDEN), lambda i: (0, 0)),      # packed biases
                pl.BlockSpec((HIDDEN, HIDDEN), lambda i: (0, 0)), # w2 resident
                pl.BlockSpec((HIDDEN, n_pad), lambda i: (0, 0)),  # w3 resident
            ],
            out_specs=pl.BlockSpec((TB, n_pad), lambda i: (i, 0)),
        ),
        compiler_params=pltpu.CompilerParams(
            dimension_semantics=("parallel",),
            vmem_limit_bytes=32 * 1024 * 1024),
        cost_estimate=pl.CostEstimate(
            flops=flops, transcendentals=0, bytes_accessed=bytes_accessed),
    )(x, w1, bias_pack, w2_bf, w3_pad_bf)

    # Drop batch padding and the zero-padded action lanes.
    return out[:B, :n_actions]


def init_linear(key, fan_in, fan_out):
    """torch.nn.Linear default init (U[-1/sqrt(fan_in), 1/sqrt(fan_in)]).
    Weight stored as (in, out) so the kernel computes x @ W + b."""
    kw, kb = jax.random.split(key)
    bound = 1.0 / math.sqrt(fan_in)
    w = jax.random.uniform(kw, (fan_in, fan_out), jnp.float32, -bound, bound)
    b = jax.random.uniform(kb, (1, fan_out), jnp.float32, -bound, bound)
    return w, b


def reference_forward(x, w1, b1, w2, b2, w3, b3):
    h1 = jnp.maximum(x @ w1 + b1, 0.0)
    h2 = jnp.maximum(h1 @ w2 + b2, 0.0)
    return jnp.maximum(h2 @ w3 + b3, 0.0)


if __name__ == "__main__":
    # CartPole-v1: n_observations = 4, n_actions = 2
    n_observations = 4
    n_actions = 2
    batch = 8

    key = jax.random.PRNGKey(0)
    kx, k1, k2, k3 = jax.random.split(key, 4)

    x = jax.random.normal(kx, (batch, n_observations), jnp.float32)
    w1, b1 = init_linear(k1, n_observations, HIDDEN)
    w2, b2 = init_linear(k2, HIDDEN, HIDDEN)
    w3, b3 = init_linear(k3, HIDDEN, n_actions)

    # One-time parameter prep (bf16 casts, Q-head padding, bias packing).
    params = prepare_params(w1, b1, w2, b2, w3, b3)

    out = dqn_forward(x, *params, n_actions)
    out = jax.block_until_ready(out)

    # Correctness vs. pure-f32 JAX reference (kernel uses bf16 MXU operands
    # with f32 accumulation, so allow a small tolerance).
    ref = reference_forward(x, w1, b1, w2, b2, w3, b3)
    assert out.shape == (batch, n_actions)
    assert jnp.allclose(out, ref, atol=1e-2, rtol=1e-2), float(
        jnp.max(jnp.abs(out - ref)))

    print("KERNEL_OK")
</pallas_src>

<mosaic_0001>
module attributes {stable_mosaic.version = 11 : i64} {
  func.func @dqn_kernel(%arg0: i32, %arg1: memref<8x4xf32, #tpu.memory_space<vmem>>, %arg2: memref<4x128xf32, #tpu.memory_space<vmem>>, %arg3: memref<8x128xf32, #tpu.memory_space<vmem>>, %arg4: memref<128x128xbf16, #tpu.memory_space<vmem>>, %arg5: memref<128x8xbf16, #tpu.memory_space<vmem>>, %arg6: memref<8x8xf32, #tpu.memory_space<vmem>>) attributes {dimension_semantics = [#tpu.dimension_semantics<parallel>], iteration_bounds = array<i64: 1>, scalar_prefetch = 0 : i64, scratch_operands = 0 : i64, tpu.core_type = #tpu.core_type<tc>, window_params = [{transform_indices = @transform_0, window_bounds = array<i64: 8, 4>}, {pipeline_mode = #tpu.pipeline_mode<synchronous>, transform_indices = @transform_1, window_bounds = array<i64: 4, 128>}, {pipeline_mode = #tpu.pipeline_mode<synchronous>, transform_indices = @transform_2, window_bounds = array<i64: 8, 128>}, {pipeline_mode = #tpu.pipeline_mode<synchronous>, transform_indices = @transform_3, window_bounds = array<i64: 128, 128>}, {pipeline_mode = #tpu.pipeline_mode<synchronous>, transform_indices = @transform_4, window_bounds = array<i64: 128, 8>}, {transform_indices = @transform_5, window_bounds = array<i64: 8, 8>}]} {
    %c0 = arith.constant 0 : index
    %c0_0 = arith.constant 0 : index
    %0 = vector.load %arg1[%c0, %c0_0] : memref<8x4xf32, #tpu.memory_space<vmem>>, vector<8x4xf32>
    %c0_1 = arith.constant 0 : index
    %c0_2 = arith.constant 0 : index
    %1 = vector.load %arg2[%c0_1, %c0_2] : memref<4x128xf32, #tpu.memory_space<vmem>>, vector<4x128xf32>
    %2 = vector.extract_strided_slice %0 {offsets = [0, 0], sizes = [8, 1], strides = [1, 1]} : vector<8x4xf32> to vector<8x1xf32>
    %3 = vector.extract_strided_slice %1 {offsets = [0, 0], sizes = [1, 128], strides = [1, 1]} : vector<4x128xf32> to vector<1x128xf32>
    %4 = vector.broadcast %2 : vector<8x1xf32> to vector<8x128xf32>
    %5 = vector.broadcast %3 : vector<1x128xf32> to vector<8x128xf32>
    %6 = arith.mulf %4, %5 : vector<8x128xf32>
    %c0_3 = arith.constant 0 : index
    %c0_4 = arith.constant 0 : index
    %7 = vector.load %arg3[%c0_3, %c0_4] : memref<8x128xf32, #tpu.memory_space<vmem>>, vector<1x128xf32>
    %8 = vector.broadcast %7 : vector<1x128xf32> to vector<8x128xf32>
    %9 = arith.addf %6, %8 : vector<8x128xf32>
    %10 = vector.extract_strided_slice %0 {offsets = [0, 1], sizes = [8, 1], strides = [1, 1]} : vector<8x4xf32> to vector<8x1xf32>
    %11 = vector.extract_strided_slice %1 {offsets = [1, 0], sizes = [1, 128], strides = [1, 1]} : vector<4x128xf32> to vector<1x128xf32>
    %12 = vector.broadcast %10 : vector<8x1xf32> to vector<8x128xf32>
    %13 = vector.broadcast %11 : vector<1x128xf32> to vector<8x128xf32>
    %14 = arith.mulf %12, %13 : vector<8x128xf32>
    %15 = arith.addf %9, %14 : vector<8x128xf32>
    %16 = vector.extract_strided_slice %0 {offsets = [0, 2], sizes = [8, 1], strides = [1, 1]} : vector<8x4xf32> to vector<8x1xf32>
    %17 = vector.extract_strided_slice %1 {offsets = [2, 0], sizes = [1, 128], strides = [1, 1]} : vector<4x128xf32> to vector<1x128xf32>
    %18 = vector.broadcast %16 : vector<8x1xf32> to vector<8x128xf32>
    %19 = vector.broadcast %17 : vector<1x128xf32> to vector<8x128xf32>
    %20 = arith.mulf %18, %19 : vector<8x128xf32>
    %21 = arith.addf %15, %20 : vector<8x128xf32>
    %22 = vector.extract_strided_slice %0 {offsets = [0, 3], sizes = [8, 1], strides = [1, 1]} : vector<8x4xf32> to vector<8x1xf32>
    %23 = vector.extract_strided_slice %1 {offsets = [3, 0], sizes = [1, 128], strides = [1, 1]} : vector<4x128xf32> to vector<1x128xf32>
    %24 = vector.broadcast %22 : vector<8x1xf32> to vector<8x128xf32>
    %25 = vector.broadcast %23 : vector<1x128xf32> to vector<8x128xf32>
    %26 = arith.mulf %24, %25 : vector<8x128xf32>
    %27 = arith.addf %21, %26 : vector<8x128xf32>
    %cst = arith.constant 0.000000e+00 : f32
    %28 = vector.broadcast %cst : f32 to vector<8x128xf32>
    %29 = arith.maximumf %27, %28 : vector<8x128xf32>
    %30 = arith.truncf %29 : vector<8x128xf32> to vector<8x128xbf16>
    %c0_5 = arith.constant 0 : index
    %c0_6 = arith.constant 0 : index
    %31 = vector.load %arg4[%c0_5, %c0_6] : memref<128x128xbf16, #tpu.memory_space<vmem>>, vector<128x128xbf16>
    %cst_7 = arith.constant dense<0.000000e+00> : vector<8x128xf32>
    %32 = tpu.matmul %30, %31, %cst_7 {dimension_numbers = #tpu.dot_dimension_numbers<[1], [0], [0], [1], [0, 0, 1, 1], [], []>} : vector<8x128xbf16>, vector<128x128xbf16>, vector<8x128xf32> -> vector<8x128xf32>
    %c1 = arith.constant 1 : index
    %c0_8 = arith.constant 0 : index
    %33 = vector.load %arg3[%c1, %c0_8] : memref<8x128xf32, #tpu.memory_space<vmem>>, vector<1x128xf32>
    %34 = vector.broadcast %33 : vector<1x128xf32> to vector<8x128xf32>
    %35 = arith.addf %32, %34 : vector<8x128xf32>
    %cst_9 = arith.constant 0.000000e+00 : f32
    %36 = vector.broadcast %cst_9 : f32 to vector<8x128xf32>
    %37 = arith.maximumf %35, %36 : vector<8x128xf32>
    %38 = arith.truncf %37 : vector<8x128xf32> to vector<8x128xbf16>
    %c0_10 = arith.constant 0 : index
    %c0_11 = arith.constant 0 : index
    %39 = vector.load %arg5[%c0_10, %c0_11] : memref<128x8xbf16, #tpu.memory_space<vmem>>, vector<128x8xbf16>
    %cst_12 = arith.constant dense<0.000000e+00> : vector<8x8xf32>
    %40 = tpu.matmul %38, %39, %cst_12 {dimension_numbers = #tpu.dot_dimension_numbers<[1], [0], [0], [1], [0, 0, 1, 1], [], []>} : vector<8x128xbf16>, vector<128x8xbf16>, vector<8x8xf32> -> vector<8x8xf32>
    %c2 = arith.constant 2 : index
    %c0_13 = arith.constant 0 : index
    %41 = vector.load %arg3[%c2, %c0_13] : memref<8x128xf32, #tpu.memory_space<vmem>>, vector<1x8xf32>
    %42 = vector.broadcast %41 : vector<1x8xf32> to vector<8x8xf32>
    %43 = arith.addf %40, %42 : vector<8x8xf32>
    %cst_14 = arith.constant 0.000000e+00 : f32
    %44 = vector.broadcast %cst_14 : f32 to vector<8x8xf32>
    %45 = arith.maximumf %43, %44 : vector<8x8xf32>
    %c0_15 = arith.constant 0 : index
    %c0_16 = arith.constant 0 : index
    %46 = vector.load %arg6[%c0_15, %c0_16] : memref<8x8xf32, #tpu.memory_space<vmem>>, vector<8x8xf32>
    tpu.vector_store %arg6[%c0_15, %c0_16], %45 {strides = array<i32>} : memref<8x8xf32, #tpu.memory_space<vmem>>, vector<8x8xf32>,
    return
  }
  func.func @transform_0(%arg0: i32) -> (i32, i32) {
    %c0_i32 = arith.constant 0 : i32
    %c0_i32_0 = arith.constant 0 : i32
    return %arg0, %c0_i32 : i32, i32
  }
  func.func @transform_1(%arg0: i32) -> (i32, i32) {
    %c0_i32 = arith.constant 0 : i32
    %c0_i32_0 = arith.constant 0 : i32
    %c0_i32_1 = arith.constant 0 : i32
    return %c0_i32, %c0_i32_0 : i32, i32
  }
  func.func @transform_2(%arg0: i32) -> (i32, i32) {
    %c0_i32 = arith.constant 0 : i32
    %c0_i32_0 = arith.constant 0 : i32
    %c0_i32_1 = arith.constant 0 : i32
    return %c0_i32, %c0_i32_0 : i32, i32
  }
  func.func @transform_3(%arg0: i32) -> (i32, i32) {
    %c0_i32 = arith.constant 0 : i32
    %c0_i32_0 = arith.constant 0 : i32
    %c0_i32_1 = arith.constant 0 : i32
    return %c0_i32, %c0_i32_0 : i32, i32
  }
  func.func @transform_4(%arg0: i32) -> (i32, i32) {
    %c0_i32 = arith.constant 0 : i32
    %c0_i32_0 = arith.constant 0 : i32
    %c0_i32_1 = arith.constant 0 : i32
    return %c0_i32, %c0_i32_0 : i32, i32
  }
  func.func @transform_5(%arg0: i32) -> (i32, i32) {
    %c0_i32 = arith.constant 0 : i32
    %c0_i32_0 = arith.constant 0 : i32
    return %arg0, %c0_i32 : i32, i32
  }
}

</mosaic_0001>

<bundles_post_ra>
// kernel: tpu_custom_call.1
= control target key start
LH: loop header
LB: loop body
LE: loop exit
PB: predicated region body
PF: predicated region fallthrough
CT: control target
= control target key end

     0   :  { %v354_v2 = vmov 0   ;;  %v355_v3 = vmov 2   ;;  %s455_s0 = inlined_call_operand.vmem [shape: f32[8,4], index: 0, kind: input, shape index: {}]   ;;  %s456_s1 = inlined_call_operand.vmem [shape: f32[4,128], index: 1, kind: input, shape index: {}]   ;;  %s457_s2 = inlined_call_operand.vmem [shape: f32[8,128], index: 2, kind: input, shape index: {}]   ;;  %s458_s3 = inlined_call_operand.vmem [shape: bf16[128,128], index: 3, kind: input, shape index: {}]   ;;  %s459_s4 = inlined_call_operand.vmem [shape: bf16[128,8], index: 4, kind: input, shape index: {}]   ;;  %s460_s5 = inlined_call_operand.hbm [shape: f32[8,8], index: 5, kind: output, shape index: {}]  }
   0x1   :  { %v21_v0 = vld [vmem:[%s455_s0] sm:$0xff]  ;;  %v306_v1 = vld [vmem:[%s458_s3 + $0x38] sm:$0xff]  ;;  %320 = vset.pattern.permute.xlu0 %v354_v2  ;;  %322 = vset.pattern.permute.xlu1 %v355_v3  ;;  %v305_v4 = vld [vmem:[%s458_s3 + $0x30] sm:$0xff] }
   0x2   :  { %25 = vperm.xlu0 %320, %v21_v0   ;;  %41 = vperm.xlu1 %322, %v21_v0  }
   0x3   :  { %122 = vmatpush.bf16.msra.mxu0 %v306_v1 }
   0x4   :  { %10 = vsyncpa [#allocation3], 0  ;;  %v304_v5 = vld [vmem:[%s458_s3 + $0x28] sm:$0xff]  ;;  %v356_v6 = vmov 1   ;;  %v357_v7 = vmov 3   ;;  %v303_v8 = vld [vmem:[%s458_s3 + $0x20] sm:$0xff] }
   0x5   :  { %v302_v9 = vld [vmem:[%s458_s3 + $0x18] sm:$0xff]  ;;  %v301_v10 = vld [vmem:[%s458_s3 + $0x10] sm:$0xff]  ;;  %v300_v11 = vld [vmem:[%s458_s3 + $0x8] sm:$0xff]  ;;  %s358_s6 = smov [#allocation2]   ;;  %s226_s9 = sshll.u32 %s460_s5, 4  ;;  %vm217_vm0 = vcmask 64512   ;;  %s227_s9 = int_to_ptr.hbm [resolvable:$true] %s226_s9 }
   0x6   :  { %v299_v12 = vld [vmem:[%s458_s3] sm:$0xff]  ;;  %v314_v13 = vld [vmem:[%s459_s4 + $0x38] sm:$0xff]  ;;  %v313_v14 = vld [vmem:[%s459_s4 + $0x30] sm:$0xff]  ;;  %s224_s7 = sshll.u32 %s358_s6, 4  ;;  %s225_s7 = int_to_ptr.vmem [resolvable:$true] %s224_s7 }
   0x7   :  { %123 = vmatpush.bf16.msra.mxu0 %v305_v4  ;;  %203 = vmatpush.bf16.msra.mxu1 %v314_v13  ;;  %v312_v15 = vld [vmem:[%s459_s4 + $0x28] sm:$0xff]  ;;  %v22_v16 = vld [vmem:[%s456_s1] sm:$0xf]  ;;  %v310_v21 = vld [vmem:[%s459_s4 + $0x18] sm:$0xff] }
   0x8   :  { %v311_v19 = vld [vmem:[%s459_s4 + $0x20] sm:$0xff]  ;;  %v28_v20 = vperm.slane %v22_v16, 0  ;;  %v37_v24 = vperm.slane %v22_v16, 1  ;;  %v44_v25 = vperm.slane %v22_v16, 2  ;;  %v51_v26 = vperm.slane %v22_v16, 3  ;;  %v309_v27 = vld [vmem:[%s459_s4 + $0x10] sm:$0xff] }
   0x9   :  { %v325_v22 = vld [vmem:[%s457_s2] ss:$0 sm:$0xff]  ;;  %v308_v39 = vld [vmem:[%s459_s4 + $0x8] sm:$0xff]  ;;  %v326_v41 = vld [vmem:[%s457_s2 + $0x1] ss:$0 sm:$0xff] }
   0xa   :  { %321 = vset.pattern.permute.xlu0 %v356_v6  ;;  %323 = vset.pattern.permute.xlu1 %v357_v7  ;;  %v307_v40 = vld [vmem:[%s459_s4] sm:$0xff] }
   0xb   :  { %34 = vperm.xlu0 %321, %v21_v0   ;;  %48 = vperm.xlu1 %323, %v21_v0   ;;  %v327_v47 = vld [vmem:[%s457_s2 + $0x2] ss:$0 sm:$0xff] }
   0xc   :  { %124 = vmatpush.bf16.msra.mxu0 %v304_v5  ;;  %204 = vmatpush.bf16.msra.mxu1 %v313_v14 }
  0x10   :  { %125 = vmatpush.bf16.msra.mxu0 %v303_v8  ;;  %205 = vmatpush.bf16.msra.mxu1 %v312_v15 }
  0x13   :  { %324 = vset.pattern.permute.xlu0 %v357_v7 }
  0x14   :  { %126 = vmatpush.bf16.msra.mxu0 %v302_v9  ;;  %206 = vmatpush.bf16.msra.mxu1 %v311_v19 }
  0x18   :  { %127 = vmatpush.bf16.msra.mxu0 %v301_v10  ;;  %207 = vmatpush.bf16.msra.mxu1 %v310_v21 }
  0x1c   :  { %128 = vmatpush.bf16.msra.mxu0 %v300_v11  ;;  %208 = vmatpush.bf16.msra.mxu1 %v309_v27 }
  0x20   :  { %129 = vmatpush.bf16.msra.mxu0 %v299_v12  ;;  %209 = vmatpush.bf16.msra.mxu1 %v308_v39 }
  0x24   :  { %210 = vmatpush.bf16.msra.mxu1 %v307_v40 }
  0x74   :  { %v26_v17 = vpop.permute.xlu0 %25  ;;  %v42_v18 = vpop.permute.xlu1 %41 }
  0x75   :  { %v29_v23 = vmul.f32 %v28_v20, %v26_v17  ;;  %v45_v32 = vmul.f32 %v44_v25, %v42_v18 }
  0x77   :  { %v32_v30 = vadd.f32 %v325_v22, %v29_v23 }
  0x7d   :  { %v35_v28 = vpop.permute.xlu0 %34  ;;  %v49_v29 = vpop.permute.xlu1 %48 }
  0x7e   :  { %v38_v31 = vmul.f32 %v37_v24, %v35_v28  ;;  %v52_v34 = vmul.f32 %v51_v26, %v49_v29 }
  0x80   :  { %v39_v33 = vadd.f32 %v38_v31, %v32_v30 }
  0x82   :  { %v46_v35 = vadd.f32 %v45_v32, %v39_v33 }
  0x84   :  { %v53_v36 = vadd.f32 %v52_v34, %v46_v35 }
  0x86   :  { %v54_v37 = vmax.f32 %v53_v36, 0.0 }
  0x88   :  { %v55_v38 = vpack.c.bf16 %v54_v37, %v54_v37 }
  0x8a   :  { %130 = vmatmul.bf16.vlgmr.msra.gmra.mxu0 %v55_v38 }
 0x107   :  { %v131_v42 = vpop.f32.mrf.mxu0 }
 0x108   :  { %v132_v43 = vadd.f32 %v326_v41, %v131_v42 }
 0x10a   :  { %v135_v44 = vmax.f32 %v132_v43, 0.0 }
 0x10c   :  { %v136_v45 = vpack.c.bf16 %v135_v44, %v135_v44 }
 0x10e   :  { %211 = vmatmul.bf16.vlgmr.msra.gmra.mxu1 %v136_v45 }
 0x10f   :  { %v133_v46 = vpop.f32.mrf.mxu0 }
 0x18b   :  { %v212_v48 = vpop.f32.mrf.mxu1 }
 0x18c   :  { %v213_v49 = vadd.f32 %v327_v47, %v212_v48 }
 0x18e   :  { %v216_v50 = vmax.f32 %v213_v49, 0.0 }
 0x190   :  { %218 = vst.msk [vmem:[#allocation2] sm:$0xff] %vm217_vm0, %v216_v50 }
 0x191   :  { %229 = dma.vmem_to_hbm [thread:$0]  %s225_s7, 128, %s227_s9, [#allocation3]  }
 0x193   :  { %v214_v51 = vpop.f32.mrf.mxu1 }
 0x194   :  { %352 = dma.done.wait [#allocation3], 128  }
 0x195   :  { %353 = vsyncadd [#allocation3], 4294967168 }
 0x196   :  { %234 = vsyncpa [#allocation3], 1 }

</bundles_post_ra>
